<compile_context>
chip_gen: v5e
topology: v5e:2x2
jax: 0.10.0
libtpu: 0.0.40
codegen_flags: <defaults>
</compile_context>

<pallas_src>
import functools

import jax
import jax.numpy as jnp
from jax import lax
from jax.experimental import pallas as pl
from jax.experimental.pallas import tpu as pltpu


def _round_up(x, m):
    return (x + m - 1) // m * m


def _rpn_kernel(x_ref, w3_ref, b3_ref, wh_ref, bh_ref, cls_ref, reg_ref,
                cols_ref, *, K, Cin, Wp, Lout, A_pad):
    # x_ref   : (1, Cin, Lin) bf16  one image, zero-padded halo + lane padding,
    #           padded spatial grid flattened on lanes as p = y*Wp + x.
    # w3_ref  : (Cout, K*K*Cin) bf16   3x3 conv weight, im2col-flattened.
    # b3_ref  : (Cout, 1) f32
    # wh_ref  : (A_pad + R_pad, Cout) bf16  fused [cls ; reg] head (row-padded)
    # bh_ref  : (A_pad + R_pad, 1) f32
    # cls_ref : (1, A_pad, Lout) f32   classification logits (lane-dense)
    # reg_ref : (1, R_pad, Lout) f32   regression outputs    (lane-dense)
    # cols_ref: (K*K*Cin, Lout) bf16 scratch — in-kernel im2col patches.
    x = x_ref[0]                                            # (Cin, Lin)

    # In-kernel im2col: tap (dy, dx) of output column p reads x[p + dy*Wp + dx]
    # — a static lane-shifted slice (cheap lane rotations, no HBM expansion).
    for t in range(K * K):
        dy, dx = divmod(t, K)
        off = dy * Wp + dx
        cols_ref[t * Cin:(t + 1) * Cin, :] = x[:, off:off + Lout]

    # 3x3 conv == ONE MXU matmul, contraction K = K*K*Cin.
    h = jnp.dot(w3_ref[...], cols_ref[...],
                preferred_element_type=jnp.float32)         # (Cout, Lout)
    h = jnp.maximum(h + b3_ref[...], 0.0)                   # bias + ReLU (f32)

    # Fused 1x1 heads: one (A_pad+R_pad, Cout) @ (Cout, Lout) matmul.
    heads = jnp.dot(wh_ref[...], h.astype(jnp.bfloat16),
                    preferred_element_type=jnp.float32)     # (A_pad+R_pad, L)
    heads = heads + bh_ref[...]

    cls_ref[0, :, :] = heads[:A_pad, :]
    reg_ref[0, :, :] = heads[A_pad:, :]


def rpn_forward(feature_map_nchw, params, *, conv_size):
    """RPN forward pass.

    feature_map_nchw: (B, Cin, H, W) float32 (PyTorch convention).
    Returns (classification_op, regression_op) matching the PyTorch module:
      classification_op: (B*Ho*Wo*A,) float32
      regression_op:     (B*Ho*Wo*A, 4) float32
    (For conv_size=3, padding=1 => Ho=H, Wo=W; padding=1 is hard-coded in the
    module.)
    """
    w3, b3, wc, bc, wr, br = (params["w3"], params["b3"], params["wc"],
                              params["bc"], params["wr"], params["br"])
    B, Cin, H, W = feature_map_nchw.shape
    K = conv_size
    pad = 1  # the module hard-codes padding=1
    Ho = H + 2 * pad - K + 1
    Wo = W + 2 * pad - K + 1
    Hp, Wp = H + 2 * pad, W + 2 * pad
    Cout = w3.shape[-1]
    A = wc.shape[-1]
    A_pad = _round_up(A, 8)          # cls head rows padded to a sublane tile
    R_pad = _round_up(4 * A, 8)      # reg head rows padded to a sublane tile
    NHp = A_pad + R_pad
    KKC = K * K * Cin

    # Lane-dense flattened-spatial layout: Lout columns (multiple of 128) are
    # computed per image; only p = y*Wp + x with y < Ho, x < Wo are valid and
    # get extracted after the call.  Lin adds the im2col halo so the static
    # in-kernel tap slices stay in bounds.
    Lval = Hp * Wp
    Lout = _round_up(Lval, 128)
    halo = (K - 1) * Wp + (K - 1)
    Lin = _round_up(Lout + halo, 128)

    # --- Activation prep: bf16 cast, zero-pad halo, flatten spatial ----------
    x = feature_map_nchw.astype(jnp.bfloat16)
    xpad = jnp.pad(x, ((0, 0), (0, 0), (pad, pad), (pad, pad)))   # (B,Cin,Hp,Wp)
    xflat = xpad.reshape(B, Cin, Lval)
    xflat = jnp.pad(xflat, ((0, 0), (0, 0), (0, Lin - Lval)))     # (B,Cin,Lin)

    # --- Weight / bias prep (kernel-friendly transposed, row-padded) ---------
    # w3 is HWIO (K,K,Cin,Cout); its flatten order matches the in-kernel
    # im2col row order (tap = dy*K + dx, then ci).
    w3f = w3.reshape(KKC, Cout).T.astype(jnp.bfloat16)            # (Cout, KKC)
    b3c = b3.reshape(Cout, 1).astype(jnp.float32)
    wh = jnp.zeros((NHp, Cout), jnp.float32)
    wh = wh.at[:A].set(wc.T).at[A_pad:A_pad + 4 * A].set(wr.T)
    wh = wh.astype(jnp.bfloat16)                                  # (NHp, Cout)
    bh = jnp.zeros((NHp, 1), jnp.float32)
    bh = bh.at[:A, 0].set(bc).at[A_pad:A_pad + 4 * A, 0].set(br)  # (NHp, 1)

    flops = 2 * B * Lout * (Cout * KKC + NHp * Cout)
    bytes_accessed = (xflat.size * 2 + w3f.size * 2 + wh.size * 2
                      + b3c.size * 4 + bh.size * 4 + B * NHp * Lout * 4)

    kernel = functools.partial(_rpn_kernel, K=K, Cin=Cin, Wp=Wp, Lout=Lout,
                               A_pad=A_pad)

    cls_pad, reg_pad = pl.pallas_call(
        kernel,
        out_shape=(jax.ShapeDtypeStruct((B, A_pad, Lout), jnp.float32),
                   jax.ShapeDtypeStruct((B, R_pad, Lout), jnp.float32)),
        grid_spec=pltpu.PrefetchScalarGridSpec(
            num_scalar_prefetch=0,
            grid=(B,),
            in_specs=[
                pl.BlockSpec((1, Cin, Lin), lambda b: (b, 0, 0)),
                # Grid-invariant operands: constant index_map => fetched once.
                pl.BlockSpec((Cout, KKC), lambda b: (0, 0)),
                pl.BlockSpec((Cout, 1), lambda b: (0, 0)),
                pl.BlockSpec((NHp, Cout), lambda b: (0, 0)),
                pl.BlockSpec((NHp, 1), lambda b: (0, 0)),
            ],
            out_specs=[
                pl.BlockSpec((1, A_pad, Lout), lambda b: (b, 0, 0)),
                pl.BlockSpec((1, R_pad, Lout), lambda b: (b, 0, 0)),
            ],
            scratch_shapes=[pltpu.VMEM((KKC, Lout), jnp.bfloat16)],
        ),
        compiler_params=pltpu.CompilerParams(
            dimension_semantics=("parallel",),       # 2-TC sharding on v7x
            vmem_limit_bytes=64 * 1024 * 1024),
        cost_estimate=pl.CostEstimate(flops=flops, transcendentals=0,
                                      bytes_accessed=bytes_accessed),
    )(xflat, w3f, b3c, wh, bh)

    # Extract the real head rows and the valid (y < Ho, x < Wo) columns.  Do
    # NOT remove these slices even if shapes happen to align after refactors.
    cls = cls_pad[:, :A, :Lval].reshape(B, A, Hp, Wp)[:, :, :Ho, :Wo]
    reg = reg_pad[:, :4 * A, :Lval].reshape(B, 4 * A, Hp, Wp)[:, :, :Ho, :Wo]

    # PyTorch: permute(0,2,3,1).flatten()  /  permute(0,2,3,1).reshape(-1, 4)
    classification_op = jnp.transpose(cls, (0, 2, 3, 1)).reshape(-1)
    regression_op = jnp.transpose(reg, (0, 2, 3, 1)).reshape(-1, 4)
    return classification_op, regression_op


def init_rpn_params(key, input_size, layer_size, conv_size, num_anchor):
    """Init matching the module: normal(std=0.01) weights, zero bias.

    Layouts:
      w3: (K, K, Cin, Cout)  HWIO   (torch is (Cout, Cin, K, K))
      wc: (Cout, A), wr: (Cout, 4A) (torch 1x1 convs are (O, I, 1, 1))
      biases are 1-D.
    """
    k1, k2, k3 = jax.random.split(key, 3)
    std = 0.01
    w3 = std * jax.random.normal(
        k1, (conv_size, conv_size, input_size, layer_size), jnp.float32)
    wc = std * jax.random.normal(k2, (layer_size, num_anchor), jnp.float32)
    wr = std * jax.random.normal(k3, (layer_size, 4 * num_anchor), jnp.float32)
    return {
        "w3": w3,
        "b3": jnp.zeros((layer_size,), jnp.float32),
        "wc": wc,
        "bc": jnp.zeros((num_anchor,), jnp.float32),
        "wr": wr,
        "br": jnp.zeros((4 * num_anchor,), jnp.float32),
    }


def _reference_forward(feature_map_nchw, params):
    """Pure-JAX f32 reference (lax.conv) mirroring the PyTorch module."""
    w3, b3, wc, bc, wr, br = (params["w3"], params["b3"], params["wc"],
                              params["bc"], params["wr"], params["br"])
    x = jnp.transpose(feature_map_nchw, (0, 2, 3, 1))  # NHWC
    t = lax.conv_general_dilated(
        x, w3, window_strides=(1, 1), padding=((1, 1), (1, 1)),
        dimension_numbers=("NHWC", "HWIO", "NHWC"))
    t = jnp.maximum(t + b3, 0.0)
    cls = jnp.einsum("bhwc,ca->bhwa", t, wc) + bc
    reg = jnp.einsum("bhwc,ca->bhwa", t, wr) + br
    return cls.reshape(-1), reg.reshape(-1, 4)


if __name__ == "__main__":
    # Small shapes consistent with the module: input_size=4 channels,
    # layer_size=32, conv_size=3, num_anchor=3, batch=2, spatial 16x16.
    B, INPUT_SIZE, H, W = 2, 4, 16, 16
    LAYER_SIZE, CONV_SIZE, NUM_ANCHOR = 32, 3, 3

    key = jax.random.PRNGKey(0)
    k_param, k_x = jax.random.split(key)
    params = init_rpn_params(k_param, INPUT_SIZE, LAYER_SIZE, CONV_SIZE,
                             NUM_ANCHOR)
    feature_map = jax.random.normal(k_x, (B, INPUT_SIZE, H, W), jnp.float32)

    cls_out, reg_out = rpn_forward(feature_map, params, conv_size=CONV_SIZE)
    jax.block_until_ready((cls_out, reg_out))

    # Shape checks against the PyTorch semantics.
    assert cls_out.shape == (B * H * W * NUM_ANCHOR,)
    assert reg_out.shape == (B * H * W * NUM_ANCHOR, 4)

    # Numerical check against a pure-JAX f32 reference.  The kernel uses bf16
    # MXU operands with f32 accumulation, so tolerance is relaxed accordingly.
    # TODO(synk): re-validate tolerance at production activation magnitudes.
    cls_ref, reg_ref = _reference_forward(feature_map, params)
    assert jnp.allclose(cls_out, cls_ref, atol=2e-3, rtol=2e-2)
    assert jnp.allclose(reg_out, reg_ref, atol=2e-3, rtol=2e-2)

    print("KERNEL_OK")
</pallas_src>

<mosaic_0001>
module attributes {stable_mosaic.version = 11 : i64} {
  func.func @_rpn_kernel(%arg0: i32, %arg1: memref<1x4x512xbf16, #tpu.memory_space<vmem>>, %arg2: memref<32x36xbf16, #tpu.memory_space<vmem>>, %arg3: memref<32x1xf32, #tpu.memory_space<vmem>>, %arg4: memref<24x32xbf16, #tpu.memory_space<vmem>>, %arg5: memref<24x1xf32, #tpu.memory_space<vmem>>, %arg6: memref<1x8x384xf32, #tpu.memory_space<vmem>>, %arg7: memref<1x16x384xf32, #tpu.memory_space<vmem>>, %arg8: memref<36x384xbf16, #tpu.memory_space<vmem>>) attributes {dimension_semantics = [#tpu.dimension_semantics<parallel>], iteration_bounds = array<i64: 2>, scalar_prefetch = 0 : i64, scratch_operands = 1 : i64, tpu.core_type = #tpu.core_type<tc>, window_params = [{transform_indices = @transform_0, window_bounds = array<i64: 1, 4, 512>}, {pipeline_mode = #tpu.pipeline_mode<synchronous>, transform_indices = @transform_1, window_bounds = array<i64: 32, 36>}, {pipeline_mode = #tpu.pipeline_mode<synchronous>, transform_indices = @transform_2, window_bounds = array<i64: 32, 1>}, {pipeline_mode = #tpu.pipeline_mode<synchronous>, transform_indices = @transform_3, window_bounds = array<i64: 24, 32>}, {pipeline_mode = #tpu.pipeline_mode<synchronous>, transform_indices = @transform_4, window_bounds = array<i64: 24, 1>}, {transform_indices = @transform_5, window_bounds = array<i64: 1, 8, 384>}, {transform_indices = @transform_6, window_bounds = array<i64: 1, 16, 384>}]} {
    %c0 = arith.constant 0 : index
    %c0_0 = arith.constant 0 : index
    %c0_1 = arith.constant 0 : index
    %0 = vector.load %arg1[%c0, %c0_0, %c0_1] : memref<1x4x512xbf16, #tpu.memory_space<vmem>>, vector<1x4x512xbf16>
    %1 = vector.shape_cast %0 : vector<1x4x512xbf16> to vector<4x512xbf16>
    %2 = vector.extract_strided_slice %1 {offsets = [0, 0], sizes = [4, 384], strides = [1, 1]} : vector<4x512xbf16> to vector<4x384xbf16>
    %c0_2 = arith.constant 0 : index
    %c0_3 = arith.constant 0 : index
    %3 = vector.load %arg8[%c0_2, %c0_3] : memref<36x384xbf16, #tpu.memory_space<vmem>>, vector<4x384xbf16>
    tpu.vector_store %arg8[%c0_2, %c0_3], %2 {strides = array<i32>} : memref<36x384xbf16, #tpu.memory_space<vmem>>, vector<4x384xbf16>,
    %4 = vector.extract_strided_slice %1 {offsets = [0, 1], sizes = [4, 384], strides = [1, 1]} : vector<4x512xbf16> to vector<4x384xbf16>
    %c4 = arith.constant 4 : index
    %c0_4 = arith.constant 0 : index
    %5 = vector.load %arg8[%c4, %c0_4] : memref<36x384xbf16, #tpu.memory_space<vmem>>, vector<4x384xbf16>
    tpu.vector_store %arg8[%c4, %c0_4], %4 {strides = array<i32>} : memref<36x384xbf16, #tpu.memory_space<vmem>>, vector<4x384xbf16>,
    %6 = vector.extract_strided_slice %1 {offsets = [0, 2], sizes = [4, 384], strides = [1, 1]} : vector<4x512xbf16> to vector<4x384xbf16>
    %c8 = arith.constant 8 : index
    %c0_5 = arith.constant 0 : index
    %7 = vector.load %arg8[%c8, %c0_5] : memref<36x384xbf16, #tpu.memory_space<vmem>>, vector<4x384xbf16>
    tpu.vector_store %arg8[%c8, %c0_5], %6 {strides = array<i32>} : memref<36x384xbf16, #tpu.memory_space<vmem>>, vector<4x384xbf16>,
    %8 = vector.extract_strided_slice %1 {offsets = [0, 18], sizes = [4, 384], strides = [1, 1]} : vector<4x512xbf16> to vector<4x384xbf16>
    %c12 = arith.constant 12 : index
    %c0_6 = arith.constant 0 : index
    %9 = vector.load %arg8[%c12, %c0_6] : memref<36x384xbf16, #tpu.memory_space<vmem>>, vector<4x384xbf16>
    tpu.vector_store %arg8[%c12, %c0_6], %8 {strides = array<i32>} : memref<36x384xbf16, #tpu.memory_space<vmem>>, vector<4x384xbf16>,
    %10 = vector.extract_strided_slice %1 {offsets = [0, 19], sizes = [4, 384], strides = [1, 1]} : vector<4x512xbf16> to vector<4x384xbf16>
    %c16 = arith.constant 16 : index
    %c0_7 = arith.constant 0 : index
    %11 = vector.load %arg8[%c16, %c0_7] : memref<36x384xbf16, #tpu.memory_space<vmem>>, vector<4x384xbf16>
    tpu.vector_store %arg8[%c16, %c0_7], %10 {strides = array<i32>} : memref<36x384xbf16, #tpu.memory_space<vmem>>, vector<4x384xbf16>,
    %12 = vector.extract_strided_slice %1 {offsets = [0, 20], sizes = [4, 384], strides = [1, 1]} : vector<4x512xbf16> to vector<4x384xbf16>
    %c20 = arith.constant 20 : index
    %c0_8 = arith.constant 0 : index
    %13 = vector.load %arg8[%c20, %c0_8] : memref<36x384xbf16, #tpu.memory_space<vmem>>, vector<4x384xbf16>
    tpu.vector_store %arg8[%c20, %c0_8], %12 {strides = array<i32>} : memref<36x384xbf16, #tpu.memory_space<vmem>>, vector<4x384xbf16>,
    %14 = vector.extract_strided_slice %1 {offsets = [0, 36], sizes = [4, 384], strides = [1, 1]} : vector<4x512xbf16> to vector<4x384xbf16>
    %c24 = arith.constant 24 : index
    %c0_9 = arith.constant 0 : index
    %15 = vector.load %arg8[%c24, %c0_9] : memref<36x384xbf16, #tpu.memory_space<vmem>>, vector<4x384xbf16>
    tpu.vector_store %arg8[%c24, %c0_9], %14 {strides = array<i32>} : memref<36x384xbf16, #tpu.memory_space<vmem>>, vector<4x384xbf16>,
    %16 = vector.extract_strided_slice %1 {offsets = [0, 37], sizes = [4, 384], strides = [1, 1]} : vector<4x512xbf16> to vector<4x384xbf16>
    %c28 = arith.constant 28 : index
    %c0_10 = arith.constant 0 : index
    %17 = vector.load %arg8[%c28, %c0_10] : memref<36x384xbf16, #tpu.memory_space<vmem>>, vector<4x384xbf16>
    tpu.vector_store %arg8[%c28, %c0_10], %16 {strides = array<i32>} : memref<36x384xbf16, #tpu.memory_space<vmem>>, vector<4x384xbf16>,
    %18 = vector.extract_strided_slice %1 {offsets = [0, 38], sizes = [4, 384], strides = [1, 1]} : vector<4x512xbf16> to vector<4x384xbf16>
    %c32 = arith.constant 32 : index
    %c0_11 = arith.constant 0 : index
    %19 = vector.load %arg8[%c32, %c0_11] : memref<36x384xbf16, #tpu.memory_space<vmem>>, vector<4x384xbf16>
    tpu.vector_store %arg8[%c32, %c0_11], %18 {strides = array<i32>} : memref<36x384xbf16, #tpu.memory_space<vmem>>, vector<4x384xbf16>,
    %c0_12 = arith.constant 0 : index
    %c0_13 = arith.constant 0 : index
    %20 = vector.load %arg2[%c0_12, %c0_13] : memref<32x36xbf16, #tpu.memory_space<vmem>>, vector<32x36xbf16>
    %c0_14 = arith.constant 0 : index
    %c0_15 = arith.constant 0 : index
    %21 = vector.load %arg8[%c0_14, %c0_15] : memref<36x384xbf16, #tpu.memory_space<vmem>>, vector<36x384xbf16>
    %cst = arith.constant dense<0.000000e+00> : vector<32x384xf32>
    %22 = tpu.matmul %20, %21, %cst {dimension_numbers = #tpu.dot_dimension_numbers<[1], [0], [0], [1], [0, 0, 1, 1], [], []>} : vector<32x36xbf16>, vector<36x384xbf16>, vector<32x384xf32> -> vector<32x384xf32>
    %c0_16 = arith.constant 0 : index
    %c0_17 = arith.constant 0 : index
    %23 = vector.load %arg3[%c0_16, %c0_17] : memref<32x1xf32, #tpu.memory_space<vmem>>, vector<32x1xf32>
    %24 = vector.broadcast %23 : vector<32x1xf32> to vector<32x384xf32>
    %25 = arith.addf %22, %24 : vector<32x384xf32>
    %cst_18 = arith.constant 0.000000e+00 : f32
    %26 = vector.broadcast %cst_18 : f32 to vector<32x384xf32>
    %27 = arith.maximumf %25, %26 : vector<32x384xf32>
    %c0_19 = arith.constant 0 : index
    %c0_20 = arith.constant 0 : index
    %28 = vector.load %arg4[%c0_19, %c0_20] : memref<24x32xbf16, #tpu.memory_space<vmem>>, vector<24x32xbf16>
    %29 = arith.truncf %27 : vector<32x384xf32> to vector<32x384xbf16>
    %cst_21 = arith.constant dense<0.000000e+00> : vector<24x384xf32>
    %30 = tpu.matmul %28, %29, %cst_21 {dimension_numbers = #tpu.dot_dimension_numbers<[1], [0], [0], [1], [0, 0, 1, 1], [], []>} : vector<24x32xbf16>, vector<32x384xbf16>, vector<24x384xf32> -> vector<24x384xf32>
    %c0_22 = arith.constant 0 : index
    %c0_23 = arith.constant 0 : index
    %31 = vector.load %arg5[%c0_22, %c0_23] : memref<24x1xf32, #tpu.memory_space<vmem>>, vector<24x1xf32>
    %32 = vector.broadcast %31 : vector<24x1xf32> to vector<24x384xf32>
    %33 = arith.addf %30, %32 : vector<24x384xf32>
    %34 = vector.extract_strided_slice %33 {offsets = [0, 0], sizes = [8, 384], strides = [1, 1]} : vector<24x384xf32> to vector<8x384xf32>
    %c0_24 = arith.constant 0 : index
    %c0_25 = arith.constant 0 : index
    %c0_26 = arith.constant 0 : index
    %35 = vector.load %arg6[%c0_24, %c0_25, %c0_26] : memref<1x8x384xf32, #tpu.memory_space<vmem>>, vector<1x8x384xf32>
    %36 = vector.shape_cast %35 : vector<1x8x384xf32> to vector<8x384xf32>
    %37 = vector.shape_cast %34 : vector<8x384xf32> to vector<1x8x384xf32>
    tpu.vector_store %arg6[%c0_24, %c0_25, %c0_26], %37 {strides = array<i32>} : memref<1x8x384xf32, #tpu.memory_space<vmem>>, vector<1x8x384xf32>,
    %38 = vector.extract_strided_slice %33 {offsets = [8, 0], sizes = [16, 384], strides = [1, 1]} : vector<24x384xf32> to vector<16x384xf32>
    %c0_27 = arith.constant 0 : index
    %c0_28 = arith.constant 0 : index
    %c0_29 = arith.constant 0 : index
    %39 = vector.load %arg7[%c0_27, %c0_28, %c0_29] : memref<1x16x384xf32, #tpu.memory_space<vmem>>, vector<1x16x384xf32>
    %40 = vector.shape_cast %39 : vector<1x16x384xf32> to vector<16x384xf32>
    %41 = vector.shape_cast %38 : vector<16x384xf32> to vector<1x16x384xf32>
    tpu.vector_store %arg7[%c0_27, %c0_28, %c0_29], %41 {strides = array<i32>} : memref<1x16x384xf32, #tpu.memory_space<vmem>>, vector<1x16x384xf32>,
    return
  }
  func.func @transform_0(%arg0: i32) -> (i32, i32, i32) {
    %c0_i32 = arith.constant 0 : i32
    %c0_i32_0 = arith.constant 0 : i32
    %c0_i32_1 = arith.constant 0 : i32
    return %arg0, %c0_i32, %c0_i32_0 : i32, i32, i32
  }
  func.func @transform_1(%arg0: i32) -> (i32, i32) {
    %c0_i32 = arith.constant 0 : i32
    %c0_i32_0 = arith.constant 0 : i32
    %c0_i32_1 = arith.constant 0 : i32
    return %c0_i32, %c0_i32_0 : i32, i32
  }
  func.func @transform_2(%arg0: i32) -> (i32, i32) {
    %c0_i32 = arith.constant 0 : i32
    %c0_i32_0 = arith.constant 0 : i32
    %c0_i32_1 = arith.constant 0 : i32
    return %c0_i32, %c0_i32_0 : i32, i32
  }
  func.func @transform_3(%arg0: i32) -> (i32, i32) {
    %c0_i32 = arith.constant 0 : i32
    %c0_i32_0 = arith.constant 0 : i32
    %c0_i32_1 = arith.constant 0 : i32
    return %c0_i32, %c0_i32_0 : i32, i32
  }
  func.func @transform_4(%arg0: i32) -> (i32, i32) {
    %c0_i32 = arith.constant 0 : i32
    %c0_i32_0 = arith.constant 0 : i32
    %c0_i32_1 = arith.constant 0 : i32
    return %c0_i32, %c0_i32_0 : i32, i32
  }
  func.func @transform_5(%arg0: i32) -> (i32, i32, i32) {
    %c0_i32 = arith.constant 0 : i32
    %c0_i32_0 = arith.constant 0 : i32
    %c0_i32_1 = arith.constant 0 : i32
    return %arg0, %c0_i32, %c0_i32_0 : i32, i32, i32
  }
  func.func @transform_6(%arg0: i32) -> (i32, i32, i32) {
    %c0_i32 = arith.constant 0 : i32
    %c0_i32_0 = arith.constant 0 : i32
    %c0_i32_1 = arith.constant 0 : i32
    return %arg0, %c0_i32, %c0_i32_0 : i32, i32, i32
  }
}

</mosaic_0001>

<bundles_post_ra>
// kernel: tpu_custom_call.1
= control target key start
LH: loop header
LB: loop body
LE: loop exit
PB: predicated region body
PF: predicated region fallthrough
CT: control target
= control target key end

     0   :  { %12 = vsyncpa [#allocation4], 0  ;;  %s1289_s0 = inlined_call_operand.vmem [shape: bf16[2,4,512], index: 0, kind: input, shape index: {}]   ;;  %s1290_s1 = inlined_call_operand.vmem [shape: bf16[32,36], index: 1, kind: input, shape index: {}]   ;;  %s1291_s2 = inlined_call_operand.vmem [shape: f32[32,1], index: 2, kind: input, shape index: {}]   ;;  %s1292_s3 = inlined_call_operand.vmem [shape: bf16[24,32], index: 3, kind: input, shape index: {}]   ;;  %s1293_s4 = inlined_call_operand.vmem [shape: f32[24,1], index: 4, kind: input, shape index: {}]   ;;  %s1294_s5 = inlined_call_operand.hbm [shape: f32[2,8,384], index: 5, kind: output, shape index: {0}]   ;;  %s1295_s6 = inlined_call_operand.hbm [shape: f32[2,16,384], index: 6, kind: output, shape index: {1}]  }
   0x1   :  { %14 = vsyncpa [#allocation4 + $0x1], 0 }
   0x2   :  { %15 = vsyncpa [#allocation6], 0 }
   0x3   :  { %17 = vsyncpa [#allocation6 + $0x1], 0  ;;  %s1115_s21 = smov 0   ;;  %s1117_s22 = smov 0  }
   0x4   :  { %s1119_s23 = smov 0   ;;  %s1121_s24 = smov 0  }
   0x5 LB: > { %s1136_s25 = sadd.s32 4294967295, %s1067_s24   ;;  %s838_s26 = sadd.s32 4294967294, %s1067_s24   ;;  %s1067_s24 = sphi %s1121_s24, %s1301_s24   ;;  %s1063_s23 = sphi %s1119_s23, %s1300_s23   ;;  %s1059_s22 = sphi %s1117_s22, %s1299_s22   ;;  %s1055_s21 = sphi %s1115_s21, %s1298_s21  }
   0x6   : > { %s1140_s27 = sadd.s32 1, %s1067_s24   ;;  %s140_s28 = sadd.s32 1, %s1063_s23 }
   0x7   : > { %s137_s29 = ssub.s32 %s1067_s24, %s1140_s27  ;;  %p150_p0 = scmp.ne.s32.totalorder %s1063_s23, %s1059_s22 }
   0x8   : > { %p138_p1 = scmp.eq.s32.totalorder %s137_s29, 0  ;;  %p151_p2 = scmp.eq.s32.totalorder %s1136_s25, 1 }
   0x9   : > { %p156_p3 = scmp.ne.s32.totalorder %s1059_s22, %s1055_s21  ;;  %p157_p4 = scmp.eq.s32.totalorder %s838_s26, 1 }
   0xa   : > { %s1151_s30 = scalar_select %p138_p1, %s1063_s23, %s140_s28  }
   0xb   : > { %p1153_p5 = por %p151_p2, %p150_p0  ;;  %p1157_p6 = por %p157_p4, %p156_p3 }
   0xc   : > { %p841_p7 = scmp.ge.s32.totalorder %s1067_s24, 1  ;;  %p221_p8 = scmp.lt.s32.totalorder %s1067_s24, 3 }
   0xe   : > { %p222_p9 = pnand %p841_p7, %p221_p8 }
   0xf   : > { %p256_p10 = scmp.lt.s32.totalorder (!%p222_p9), %s1136_s25, 1  ;;  %s1069_s14 = smov (!%p222_p9), 127  }
  0x10   : > { %225 = sbr.rel (%p222_p9) target bundleno = 589 (0x24d), region = 40  ;;  %s1070_s15 = smov (!%p222_p9), 109  }
  0x11   : > { %s1071_s16 = smov (!%p222_p9), 108   ;;  %s1072_s17 = smov (!%p222_p9), 92  }
  0x12   : > { %s1073_s18 = smov (!%p222_p9), 91   ;;  %s1074_s19 = smov (!%p222_p9), 126  }
  0x13   : > { %s1075_s20 = smov (!%p222_p9), 90   ;;  %s1076_s26 = smov (!%p222_p9), 110  }
  0x15   : > { %s257_s9 = scalar_select %p256_p10, %s1136_s25, 1  ;;  %vm285_vm0 = vcmask 1039360   ;;  %vm283_vm1 = vcmask 1043456   ;;  %vm363_vm2 = vcmask 883712   ;;  %vm343_vm3 = vcmask 891904  }
  0x16   : > { %vm382_vm4 = vcmask 752640   ;;  %vm402_vm5 = vcmask 744448   ;;  %vm304_vm6 = vcmask 1031168   ;;  %vm421_vm7 = vcmask 736256  }
  0x17   : > { %s896_s10 = sshll.u32 %s257_s9, 3  ;;  %vm523_vm8 = vcmask 1041408   ;;  %vm324_vm9 = vcmask 900096   ;;  %vm516_vm10 = vcmask 293888   ;;  %vm637_vm11 = vcmask 261120  }
  0x18   : > { %s260_s13 = scalar_lea.vmem %s1289_s0, %s896_s10 }
  0x19   : > { %v262_v0 = vld [vmem:[%s260_s13] sm:$0xff] }
  0x1a   : > { %264 = vst [vmem:[#allocation1] ss:$2 sm:$0xff] %v262_v0 }
  0x21   : > { %v265_v1 = vld.sshfl [vmem:[#allocation1] sm:$0xff pattern:$0x75643120]  ;;  %v266_v2 = vld.sshfl [vmem:[#allocation1 + $0x8] sm:$0xff pattern:$0x75643120] }
  0x22   : > { %272 = vst [vmem:[#allocation1 + $0x1] ss:$2 sm:$0xff] %v262_v0 }
  0x23   : > { %269 = vst [vmem:[#allocation2] sm:$0x33] %v265_v1  ;;  %v444_v1 = vld [vmem:[%s1291_s2 + $0x10] sm:$0xff] }
  0x24   : > { %270 = vst [vmem:[#allocation2 + $0x8] sm:$0x3] %v266_v2 }
  0x29   : > { %v273_v3 = vld.sshfl [vmem:[#allocation1] sm:$0xff pattern:$0x75643120]  ;;  %v275_v4 = vld.sshfl [vmem:[#allocation1 + $0x8] sm:$0xff pattern:$0x75643120] }
  0x2a   : > { %277 = vrot.lane.b32.xlu1 %v273_v3, %s1069_s14  ;;  %292 = vst [vmem:[#allocation1] ss:$2 sm:$0xff] %v262_v0  ;;  %279 = vrot.lane.b32.xlu2 %v275_v4, %s1069_s14  ;;  %v1077_v3 = vmov 0   ;;  %s1229_s14 = sand.u32 1, %s1059_s22  }
  0x2b   : > { %970 = vset.pattern.permute.xlu1 %v1077_v3  ;;  %972 = vset.pattern.permute.xlu0 %v1077_v3  ;;  %s708_s10 = scalar_lea.sflag [#allocation4], %s1229_s14 }
  0x2c   : > { %971 = vset.pattern.permute.xlu2 %v1077_v3  ;;  %v604_v3 = vld [vmem:[%s1292_s3 + $0x8] sm:$0xf] }
  0x31   : > { %v293_v5 = vld.sshfl [vmem:[#allocation1] sm:$0xff pattern:$0x75643120]  ;;  %v295_v6 = vld.sshfl [vmem:[#allocation1 + $0x8] sm:$0xff pattern:$0x75643120] }
  0x32   : > { %312 = vst [vmem:[#allocation1 + $0x1] ss:$2 sm:$0xff] %v262_v0 }
  0x39   : > { %v313_v7 = vld.sshfl [vmem:[#allocation1] sm:$0xff pattern:$0x75643120]  ;;  %v315_v8 = vld.sshfl [vmem:[#allocation1 + $0x8] sm:$0xff pattern:$0x75643120] }
  0x3a   : > { %331 = vst [vmem:[#allocation1] ss:$2 sm:$0xff] %v262_v0 }
  0x41   : > { %v332_v9 = vld.sshfl [vmem:[#allocation1] sm:$0xff pattern:$0x75643120]  ;;  %v334_v10 = vld.sshfl [vmem:[#allocation1 + $0x8] sm:$0xff pattern:$0x75643120] }
  0x42   : > { %336 = vrot.lane.b32.xlu1 %v332_v9, %s1070_s15  ;;  %351 = vst [vmem:[#allocation1 + $0x1] ss:$2 sm:$0xff] %v262_v0 }
  0x49   : > { %v352_v11 = vld.sshfl [vmem:[#allocation1] sm:$0xff pattern:$0x75643120]  ;;  %v354_v12 = vld.sshfl [vmem:[#allocation1 + $0x8] sm:$0xff pattern:$0x75643120] }
  0x4a   : > { %338 = vrot.lane.b32.xlu1 %v334_v10, %s1070_s15  ;;  %370 = vst [vmem:[#allocation1] ss:$2 sm:$0xff] %v262_v0  ;;  %356 = vrot.lane.b32.xlu2 %v352_v11, %s1071_s16  ;;  %s911_s15 = smul.u32 24, %s1229_s14 }
  0x51   : > { %v373_v13 = vld.sshfl [vmem:[#allocation1 + $0x8] sm:$0xff pattern:$0x75643120]  ;;  %v371_v14 = vld.sshfl [vmem:[#allocation1] sm:$0xff pattern:$0x75643120] }
  0x52   : > { %377 = vrot.lane.b32.xlu1 %v373_v13, %s1072_s17  ;;  %375 = vrot.lane.b32.xlu0 %v371_v14, %s1072_s17  ;;  %390 = vst [vmem:[#allocation1 + $0x1] ss:$2 sm:$0xff] %v262_v0  ;;  %s248_s17 = scalar_lea.vmem [#allocation3], %s911_s15 }
  0x53   : > { %358 = vrot.lane.b32.xlu2 %v354_v12, %s1071_s16  ;;  %s912_s16 = smul.u32 48, %s1229_s14  ;;  %s726_s29 = sshll.u32 %s248_s17, 4  ;;  %s727_s29 = int_to_ptr.vmem [resolvable:$true] %s726_s29 }
  0x59   : > { %v393_v15 = vld.sshfl [vmem:[#allocation1 + $0x8] sm:$0xff pattern:$0x75643120]  ;;  %v391_v16 = vld.sshfl [vmem:[#allocation1] sm:$0xff pattern:$0x75643120] }
  0x5a   : > { %397 = vrot.lane.b32.xlu0 %v393_v15, %s1073_s18  ;;  %409 = vst [vmem:[#allocation1] ss:$2 sm:$0xff] %v262_v0  ;;  %299 = vrot.lane.b32.xlu1 %v295_v6, %s1074_s19 }
  0x5b   : > { %395 = vrot.lane.b32.xlu2 %v391_v16, %s1073_s18  ;;  %s1233_s18 = scalar_lea.vmem [#allocation5], %s912_s16  ;;  %s993_s16 = scalar_lea.hbm %s1294_s5, 48 }
  0x61   : > { %v410_v17 = vld.sshfl [vmem:[#allocation1] sm:$0xff pattern:$0x75643120]  ;;  %v412_v18 = vld.sshfl [vmem:[#allocation1 + $0x8] sm:$0xff pattern:$0x75643120] }
  0x62   : > { %414 = vrot.lane.b32.xlu0 %v410_v17, %s1075_s20  ;;  %458 = vperm.xlu1 %970, %v444_v1  }
  0x63   : > { %317 = vrot.lane.b32.xlu2 %v313_v7, %s1076_s26 }
  0x6a   : > { %416 = vrot.lane.b32.xlu0 %v412_v18, %s1075_s20 }
  0x72   : > { %297 = vrot.lane.b32.xlu0 %v293_v5, %s1074_s19  ;;  %s913_s19 = smul.u32 24, %s1136_s25 }
  0x74   : > { %s724_s28 = scalar_lea.hbm %s1294_s5, %s913_s19 }
  0x75   : > { %s728_s9 = sshll.u32 %s724_s28, 4  ;;  %s729_s9 = int_to_ptr.hbm [resolvable:$true] %s728_s9 }
  0x76   : > { %s987_s11 = sshra.s32 %s729_s9, 4  ;;  %s988_s11 = int_to_ptr.hbm [resolvable:$true] %s987_s11 }
  0x77   : > { %s989_s12 = scalar_lea.hbm %s988_s11, 24  ;;  %p994_p0 = scmp.lt.s32.totalorder %s988_s11, %s1294_s5 }
  0x78   : > { %p990_p11 = scmp.ne.s32.totalorder %s988_s11, %s989_s12  ;;  %p995_p1 = scmp.lt.s32.totalorder %s993_s16, %s989_s12 }
  0x7a   : > { %319 = vrot.lane.b32.xlu0 %v315_v8, %s1076_s26  ;;  %p991_p12 = pnand %p990_p11, %p1153_p5  ;;  %p996_p2 = por %p995_p1, %p994_p0 }
  0x7c   : > { %p992_p13 = pneg %p991_p12 }
  0x7e   : > { %p997_p3 = pnand %p996_p2, %p992_p13 }
  0x84   : > { %v280_v19 = vpop.permute.xlu2 %279 }
  0x85   : > { %v282_v20 = vrot.slane %v280_v19, 4 }
  0x87   : > { %v287_v21 = vsel %vm285_vm0, %v280_v19, %v282_v20 }
  0x88   : > { %291 = vst [vmem:[#allocation2 + $0x8] sm:$0xc] %v287_v21 }
  0x9c   : > { %v278_v22 = vpop.permute.xlu1 %277 }
  0x9d   : > { %v281_v23 = vrot.slane %v278_v22, 4 }
  0x9f   : > { %v284_v24 = vsel %vm283_vm1, %v281_v23, %v282_v20  ;;  %v442_v23 = vld [vmem:[%s1291_s2] sm:$0xff] }
  0xa0   : > { %v286_v25 = vsel %vm285_vm0, %v278_v22, %v284_v24  ;;  %v443_v22 = vld [vmem:[%s1291_s2 + $0x8] sm:$0xff]  ;;  %448 = vperm.xlu0 %972, %v442_v23  }
  0xa1   : > { %290 = vst [vmem:[#allocation2] sm:$0xcc] %v286_v25  ;;  %453 = vperm.xlu1 %970, %v443_v22  }
  0xa4   : > { %v357_v26 = vpop.permute.xlu2 %356 }
  0xa5   : > { %v360_v27 = vrot.slane %v357_v26, 4 }
  0xad   : > { %v359_v28 = vpop.permute.xlu2 %358 }
  0xae   : > { %v361_v29 = vrot.slane %v359_v28, 4 }
  0xb0   : > { %v362_v30 = vsel %vm283_vm1, %v360_v27, %v361_v29  ;;  %v365_v31 = vsel %vm363_vm2, %v359_v28, %v361_v29 }
  0xb1   : > { %v364_v32 = vsel %vm363_vm2, %v357_v26, %v362_v30  ;;  %369 = vst [vmem:[#allocation2 + $0x20] sm:$0xc] %v365_v31  ;;  %v862_v30 = vld [vmem:[#allocation2 + $0x8] sm:$0xf] }
  0xb2   : > { %368 = vst [vmem:[#allocation2 + $0x18] sm:$0xcc] %v364_v32 }
  0xb4   : > { %v337_v33 = vpop.permute.xlu1 %336 }
  0xb5   : > { %v340_v34 = vrot.slane %v337_v33, 4  ;;  %v396_v47 = vpop.permute.xlu2 %395 }
  0xb6   : > { %v399_v48 = vrot.slane %v396_v47, 4 }
  0xbc   : > { %v339_v35 = vpop.permute.xlu1 %338 }
  0xbd   : > { %v341_v36 = vrot.slane %v339_v35, 4  ;;  %v318_v7 = vpop.permute.xlu2 %317 }
  0xbe   : > { %v321_v12 = vrot.slane %v318_v7, 4 }
  0xbf   : > { %v342_v37 = vsel %vm283_vm1, %v340_v34, %v341_v36  ;;  %v345_v38 = vsel %vm343_vm3, %v339_v35, %v341_v36  ;;  %v854_v34 = vld [vmem:[#allocation2] sm:$0xf] }
  0xc0   : > { %v344_v39 = vsel %vm343_vm3, %v337_v33, %v342_v37  ;;  %349 = vst [vmem:[#allocation2 + $0x20] sm:$0x3] %v345_v38  ;;  %v897_v37 = vld [vmem:[%s1290_s1] sm:$0xff]  ;;  %v898_v38 = vld [vmem:[%s1290_s1 + $0x8] sm:$0xff] }
  0xc1   : > { %348 = vst [vmem:[#allocation2 + $0x18] sm:$0x33] %v344_v39 }
  0xc4   : > { %v378_v40 = vpop.permute.xlu1 %377  ;;  %v376_v41 = vpop.permute.xlu0 %375 }
  0xc5   : > { %v380_v42 = vrot.slane %v378_v40, 4  ;;  %v379_v43 = vrot.slane %v376_v41, 4 }
  0xc7   : > { %v384_v44 = vsel %vm382_vm4, %v378_v40, %v380_v42  ;;  %v381_v45 = vsel %vm283_vm1, %v379_v43, %v380_v42  ;;  %v874_v16 = vld [vmem:[#allocation2 + $0x20] sm:$0xf] }
  0xc8   : > { %388 = vst [vmem:[#allocation2 + $0x2c] sm:$0x3] %v384_v44  ;;  %v383_v46 = vsel %vm382_vm4, %v376_v41, %v381_v45  ;;  %v866_v20 = vld [vmem:[#allocation2 + $0x18] sm:$0xf]  ;;  %v902_v40 = vld [vmem:[#allocation2 + $0x1c] sm:$0xf] }
  0xc9   : > { %387 = vst [vmem:[#allocation2 + $0x24] sm:$0x33] %v383_v46  ;;  %v612_v42 = vld [vmem:[%s1293_s4 + $0x8] sm:$0xff]  ;;  %v445_v44 = vld [vmem:[%s1291_s2 + $0x18] sm:$0xff] }
  0xca   : > { %621 = vperm.xlu1 %970, %v612_v42   ;;  %463 = vperm.xlu2 %971, %v445_v44   ;;  %v899_v46 = vld [vmem:[#allocation2 + $0x4] sm:$0xf] }
  0xcc   : > { %v398_v49 = vpop.permute.xlu0 %397  ;;  %v300_v50 = vpop.permute.xlu1 %299 }
  0xcd   : > { %v400_v51 = vrot.slane %v398_v49, 4  ;;  %v302_v52 = vrot.slane %v300_v50, 4 }
  0xcf   : > { %v404_v53 = vsel %vm402_vm5, %v398_v49, %v400_v51  ;;  %v401_v54 = vsel %vm283_vm1, %v399_v48, %v400_v51  ;;  %v306_v55 = vsel %vm304_vm6, %v300_v50, %v302_v52  ;;  %v611_v48 = vld [vmem:[%s1293_s4] sm:$0xff]  ;;  %v613_v49 = vld [vmem:[%s1293_s4 + $0x10] sm:$0xff] }
  0xd0   : > { %408 = vst [vmem:[#allocation2 + $0x2c] sm:$0xc] %v404_v53  ;;  %v403_v56 = vsel %vm402_vm5, %v396_v47, %v401_v54 }
  0xd1   : > { %407 = vst [vmem:[#allocation2 + $0x24] sm:$0xcc] %v403_v56 }
  0xd2   : > { %310 = vst [vmem:[#allocation2 + $0x14] sm:$0x3] %v306_v55  ;;  %616 = vperm.xlu2 %971, %v611_v48  }
  0xd4   : > { %v415_v57 = vpop.permute.xlu0 %414  ;;  %v459_v50 = vpop.permute.xlu1 %458 }
  0xd5   : > { %v418_v59 = vrot.slane %v415_v57, 4 }
  0xd7   : > { %v904_v17 = vld [vmem:[#allocation2 + $0x28] sm:$0xf0] }
  0xd8   : > { %v903_v21 = vld [vmem:[#allocation2 + $0x20] sm:$0xf0]  ;;  %v875_v26 = vor.u32 %v904_v17, %v874_v16  ;;  %v868_v41 = vld [vmem:[#allocation2 + $0x24] sm:$0xf0] }
  0xd9   : > { %v867_v28 = vor.u32 %v903_v21, %v866_v20  ;;  %v871_v43 = vor.u32 %v902_v40, %v868_v41 }
  0xda   : > { %626 = vperm.xlu2 %971, %v613_v49  }
  0xdc   : > { %v417_v58 = vpop.permute.xlu0 %416 }
  0xdd   : > { %v419_v60 = vrot.slane %v417_v58, 4 }
  0xdf   : > { %v420_v61 = vsel %vm283_vm1, %v418_v59, %v419_v60  ;;  %v423_v62 = vsel %vm421_vm7, %v417_v58, %v419_v60 }
  0xe0   : > { %v422_v63 = vsel %vm421_vm7, %v415_v57, %v420_v61  ;;  %427 = vst [vmem:[#allocation2 + $0x38] sm:$0x3] %v423_v62 }
  0xe1   : > { %426 = vst [vmem:[#allocation2 + $0x30] sm:$0x33] %v422_v63 }
  0xe4   : > { %v298_v0 = vpop.permute.xlu0 %297 }
  0xe5   : > { %v301_v2 = vrot.slane %v298_v0, 4 }
  0xe7   : > { %v303_v4 = vsel %vm283_vm1, %v301_v2, %v302_v52  ;;  %v441_v5 = vld [vmem:[#allocation2 + $0x38] sm:$0x3] }
  0xe8   : > { %v305_v6 = vsel %vm304_vm6, %v298_v0, %v303_v4  ;;  %v500_v8 = vunpack.c.l.b16 %v441_v5  ;;  %v440_v9 = vld [vmem:[#allocation2 + $0x30] sm:$0x33] }
  0xe9   : > { %309 = vst [vmem:[#allocation2 + $0xc] sm:$0x33] %v305_v6  ;;  %v498_v10 = vunpack.c.l.b16 %v440_v9  ;;  %v499_v29 = vunpack.c.h.b16 %v440_v9  ;;  %v634_v6 = vunpack.c.l.b16 %v604_v3  ;;  %v905_v9 = vld [vmem:[%s1292_s3] sm:$0xff] }
  0xea   : > { %v509_v11 = vpack.c.b16 %v500_v8, %v500_v8 }
  0xeb   : > { %v507_v13 = vpack.c.b16 %v498_v10, %v498_v10  ;;  %v508_v32 = vpack.c.b16 %v499_v29, %v499_v29  ;;  %v636_v10 = vpack.c.b16 %v634_v6, %v634_v6 }
  0xec   : > { %v320_v14 = vpop.permute.xlu0 %319  ;;  %v531_v15 = vsel %vm523_vm8, %v509_v11, 0 }
  0xed   : > { %v322_v18 = vrot.slane %v320_v14, 4  ;;  %576 = vmatpush.bf16.msra.mxu2 %v531_v15  ;;  %v525_v19 = vsel %vm523_vm8, %v507_v13, 0  ;;  %v528_v39 = vsel %vm523_vm8, %v508_v32, 0 }
  0xee   : > { %538 = vmatpush.bf16.msra.mxu0 %v525_v19  ;;  %906 = vmatpush.bf16.msra.mxu1 %v525_v19 }
  0xef   : > { %v323_v24 = vsel %vm283_vm1, %v321_v12, %v322_v18  ;;  %v326_v25 = vsel %vm324_vm9, %v320_v14, %v322_v18 }
  0xf0   : > { %v325_v27 = vsel %vm324_vm9, %v318_v7, %v323_v24  ;;  %330 = vst [vmem:[#allocation2 + $0x14] sm:$0xc] %v326_v25 }
  0xf1   : > { %329 = vst [vmem:[#allocation2 + $0xc] sm:$0xcc] %v325_v27  ;;  %577 = vmatpush.bf16.msra.mxu2 %v875_v26 }
  0xf2   : > { %539 = vmatpush.bf16.msra.mxu0 %v867_v28  ;;  %907 = vmatpush.bf16.msra.mxu1 %v867_v28 }
  0xf7   : > { %v901_v31 = vld [vmem:[#allocation2 + $0x10] sm:$0xf0] }
  0xf8   : > { %v863_v33 = vor.u32 %v901_v31, %v862_v30  ;;  %v900_v35 = vld [vmem:[#allocation2 + $0x8] sm:$0xf0]  ;;  %v856_v45 = vld [vmem:[#allocation2 + $0xc] sm:$0xf0] }
  0xf9   : > { %v855_v36 = vor.u32 %v900_v35, %v854_v34  ;;  %v859_v47 = vor.u32 %v899_v46, %v856_v45 }
  0xfa   : > { %578 = vmatpush.bf16.msra.mxu2 %v863_v33 }
  0xfb   : > { %540 = vmatpush.bf16.msra.mxu0 %v855_v36  ;;  %908 = vmatpush.bf16.msra.mxu1 %v855_v36 }
  0xfd   : > { %880 = vmatmul.msk.bf16.vlgmr.msra.gmra.mxu2 %vm516_vm10, %v897_v37 }
  0xfe   : > { %877 = vmatmul.msk.bf16.vlgmr.msra.gmra.mxu1 %vm516_vm10, %v898_v38  ;;  %876 = vmatmul.msk.bf16.vlgmr.msra.gmra.mxu0 %vm516_vm10, %v897_v37 }
  0xff   : > { %557 = vmatpush.bf16.msrb.mxu1 %v528_v39 }
 0x103   : > { %558 = vmatpush.bf16.msrb.mxu1 %v871_v43 }
 0x107   : > { %559 = vmatpush.bf16.msrb.mxu1 %v859_v47 }
 0x10d   : > { %881 = vmatmul.msk.bf16.gmra.mxu2 %vm516_vm10, %v898_v38 }
 0x10e   : > { %878 = vmatmul.msk.bf16.vlgmr.msrb.gmra.mxu1 %vm516_vm10, %v897_v37 }
 0x112   : > { %v449_v53 = vpop.permute.xlu0 %448 }
 0x113   : > { %v454_v56 = vpop.permute.xlu1 %453 }
 0x11e   : > { %879 = vmatmul.msk.bf16.gmra.mxu1 %vm516_vm10, %v898_v38 }
 0x124   : > { %v464_v55 = vpop.permute.xlu2 %463 }
 0x12c   : > { %v617_v36 = vpop.permute.xlu2 %616 }
 0x134   : > { %v627_v37 = vpop.permute.xlu2 %626 }
 0x13c   : > { %v622_v42 = vpop.permute.xlu1 %621 }
 0x17b   : > { %v547_v51 = vpop.f32.mrf.mxu1  ;;  %v542_v52 = vpop.f32.mrf.mxu0 }
 0x17c   : > { %v548_v57 = vadd.f32 %v547_v51, %v459_v50  ;;  %v543_v58 = vadd.f32 %v542_v52, %v449_v53 }
 0x17e   : > { %v596_v63 = vmax.f32 %v548_v57, 0.0  ;;  %v590_v1 = vmax.f32 %v543_v58, 0.0 }
 0x180   : > { %v580_v54 = vpop.f32.mrf.mxu2 }
 0x181   : > { %v581_v15 = vadd.f32 %v580_v54, %v449_v53 }
 0x183   : > { %v549_v59 = vpop.f32.mrf.mxu1  ;;  %v544_v60 = vpop.f32.mrf.mxu0  ;;  %v592_v21 = vmax.f32 %v581_v15, 0.0 }
 0x184   : > { %v550_v61 = vadd.f32 %v549_v59, %v464_v55  ;;  %v545_v62 = vadd.f32 %v544_v60, %v454_v56 }
 0x186   : > { %v599_v0 = vmax.f32 %v550_v61, 0.0  ;;  %v593_v2 = vmax.f32 %v545_v62, 0.0 }
 0x188   : > { %v582_v4 = vpop.f32.mrf.mxu2  ;;  %v608_v5 = vpack.c.bf16 %v599_v0, %v596_v63  ;;  %v605_v7 = vpack.c.bf16 %v593_v2, %v590_v1 }
 0x189   : > { %v583_v16 = vadd.f32 %v582_v4, %v454_v56 }
 0x18a   : > { %650 = vmatpush.bf16.msrb.mxu2 %v608_v5  ;;  %909 = vmatpush.bf16.msra.mxu3 %v608_v5 }
 0x18b   : > { %v561_v8 = vpop.f32.mrf.mxu1  ;;  %v595_v22 = vmax.f32 %v583_v16, 0.0 }
 0x18c   : > { %v562_v29 = vadd.f32 %v561_v8, %v449_v53 }
 0x18d   : > { %v607_v24 = vpack.c.bf16 %v595_v22, %v592_v21 }
 0x18e   : > { %651 = vmatpush.bf16.msrb.mxu2 %v605_v7  ;;  %910 = vmatpush.bf16.msra.mxu3 %v605_v7  ;;  %v591_v34 = vmax.f32 %v562_v29, 0.0 }
 0x190   : > { %v585_v11 = vpop.f32.mrf.mxu2 }
 0x191   : > { %886 = vmatmul.msk.bf16.vlgmr.msrb.gmra.mxu2 %vm637_vm11, %v905_v9  ;;  %887 = vmatmul.msk.bf16.vlgmr.msra.gmra.mxu3 %vm637_vm11, %v636_v10  ;;  %v586_v13 = vadd.f32 %v585_v11, %v459_v50 }
 0x193   : > { %v563_v12 = vpop.f32.mrf.mxu1  ;;  %v598_v18 = vmax.f32 %v586_v13, 0.0 }
 0x194   : > { %v564_v27 = vadd.f32 %v563_v12, %v454_v56 }
 0x196   : > { %v594_v32 = vmax.f32 %v564_v27, 0.0 }
 0x198   : > { %v587_v14 = vpop.f32.mrf.mxu2  ;;  %v606_v35 = vpack.c.bf16 %v594_v32, %v591_v34 }
 0x199   : > { %v588_v17 = vadd.f32 %v587_v14, %v464_v55 }
 0x19b   : > { %v601_v19 = vmax.f32 %v588_v17, 0.0  ;;  %v566_v20 = vpop.f32.mrf.mxu1 }
 0x19c   : > { %v567_v25 = vadd.f32 %v566_v20, %v459_v50 }
 0x19d   : > { %v610_v23 = vpack.c.bf16 %v601_v19, %v598_v18 }
 0x19e   : > { %v597_v30 = vmax.f32 %v567_v25, 0.0 }
 0x19f   : > { %686 = vmatpush.bf16.msrb.mxu0 %v610_v23 }
 0x1a3   : > { %v568_v26 = vpop.f32.mrf.mxu1  ;;  %687 = vmatpush.bf16.msrb.mxu0 %v607_v24 }
 0x1a4   : > { %v569_v28 = vadd.f32 %v568_v26, %v464_v55 }
 0x1a6   : > { %v600_v31 = vmax.f32 %v569_v28, 0.0  ;;  %890 = vmatmul.msk.bf16.vlgmr.msrb.gmra.mxu0 %vm637_vm11, %v905_v9 }
 0x1a8   : > { %v609_v33 = vpack.c.bf16 %v600_v31, %v597_v30 }
 0x1aa   : > { %668 = vmatpush.bf16.msrb.mxu3 %v609_v33 }
 0x1ae   : > { %669 = vmatpush.bf16.msrb.mxu3 %v606_v35 }
 0x1b1   : > { %888 = vmatmul.msk.bf16.vlgmr.msrb.gmra.mxu3 %vm637_vm11, %v905_v9 }
 0x1b6   : > { %891 = vmatmul.msk.bf16.gmra.mxu0 %vm637_vm11, %v636_v10 }
 0x1c1   : > { %889 = vmatmul.msk.bf16.gmra.mxu3 %vm637_vm11, %v636_v10 }
 0x214   : > { %v653_v38 = vpop.f32.mrf.mxu2  ;;  %v658_v39 = vpop.f32.mrf.mxu3 }
 0x215   : > { %v654_v40 = vadd.f32 %v653_v38, %v617_v36  ;;  %v659_v41 = vadd.f32 %v658_v39, %v627_v37 }
 0x217   : > { %698 = vst [vmem:[%s248_s17] sm:$0xff] %v654_v40 }
 0x218   : > { %704 = vst [vmem:[%s1233_s18 + $0x18] sm:$0xff] %v659_v41 }
 0x21c   : > { %v655_v43 = vpop.f32.mrf.mxu2  ;;  %v660_v44 = vpop.f32.mrf.mxu3 }
 0x21d   : > { %v656_v45 = vadd.f32 %v655_v43, %v622_v42 }
 0x21f   : > { %701 = vst [vmem:[%s1233_s18] sm:$0xff] %v656_v45 }
 0x223   : > { %v689_v46 = vpop.f32.mrf.mxu0 }
 0x224   : > { %v690_v47 = vadd.f32 %v689_v46, %v617_v36 }
 0x226   : > { %700 = vst [vmem:[%s248_s17 + $0x10] sm:$0xff] %v690_v47 }
 0x22b   : > { %v691_v48 = vpop.f32.mrf.mxu0 }
 0x22c   : > { %v692_v49 = vadd.f32 %v691_v48, %v622_v42 }
 0x22e   : > { %703 = vst [vmem:[%s1233_s18 + $0x10] sm:$0xff] %v692_v49 }
 0x233   : > { %v694_v50 = vpop.f32.mrf.mxu0 }
 0x234   : > { %v695_v51 = vadd.f32 %v694_v50, %v627_v37  ;;  %v671_v52 = vpop.f32.mrf.mxu3 }
 0x235   : > { %v672_v53 = vadd.f32 %v671_v52, %v617_v36 }
 0x236   : > { %706 = vst [vmem:[%s1233_s18 + $0x28] sm:$0xff] %v695_v51 }
 0x237   : > { %699 = vst [vmem:[%s248_s17 + $0x8] sm:$0xff] %v672_v53 }
 0x238   : > { %1000 = shalt.err (!%p997_p3)
}
 0x239   : > { %915 = dma.vmem_to_hbm [thread:$0]  (%p1153_p5), %s727_s29, 384, %s729_s9, %s708_s10  }
 0x23a   : > { %s914_s17 = smul.u32 48, %s1136_s25  ;;  %s740_s12 = sshll.u32 %s1233_s18, 4  ;;  %s741_s12 = int_to_ptr.vmem [resolvable:$true] %s740_s12 }
 0x23b   : > { %v696_v54 = vpop.f32.mrf.mxu0  ;;  %s713_s15 = scalar_lea.sflag [#allocation6], %s1229_s14  ;;  %s1021_s10 = scalar_lea.hbm %s1295_s6, 96 }
 0x23c   : > { %v673_v55 = vpop.f32.mrf.mxu3  ;;  %s739_s11 = scalar_lea.hbm %s1295_s6, %s914_s17 }
 0x23d   : > { %v674_v56 = vadd.f32 %v673_v55, %v622_v42  ;;  %s742_s13 = sshll.u32 %s739_s11, 4  ;;  %s743_s13 = int_to_ptr.hbm [resolvable:$true] %s742_s13 }
 0x23e   : > { %s1015_s16 = sshra.s32 %s743_s13, 4  ;;  %s1016_s16 = int_to_ptr.hbm [resolvable:$true] %s1015_s16 }
 0x23f   : > { %702 = vst [vmem:[%s1233_s18 + $0x8] sm:$0xff] %v674_v56  ;;  %s1017_s29 = scalar_lea.hbm %s1016_s16, 48  ;;  %p1022_p9 = scmp.lt.s32.totalorder %s1016_s16, %s1295_s6 }
 0x240   : > { %p1018_p4 = scmp.ne.s32.totalorder %s1016_s16, %s1017_s29  ;;  %p1023_p10 = scmp.lt.s32.totalorder %s1021_s10, %s1017_s29 }
 0x242   : > { %p1019_p7 = pnand %p1018_p4, %p1153_p5  ;;  %p1024_p11 = por %p1023_p10, %p1022_p9 }
 0x244   : > { %v676_v57 = vpop.f32.mrf.mxu3  ;;  %p1020_p8 = pneg %p1019_p7 }
 0x245   : > { %v677_v58 = vadd.f32 %v676_v57, %v627_v37 }
 0x246   : > { %p1025_p12 = pnand %p1024_p11, %p1020_p8 }
 0x247   : > { %705 = vst [vmem:[%s1233_s18 + $0x20] sm:$0xff] %v677_v58 }
 0x248   : > { %1028 = shalt.err (!%p1025_p12)
}
 0x249   : > { %s1078_s14 = smov 384   ;;  %s1079_s18 = smov 24  }
 0x24a   : > { %916 = dma.vmem_to_hbm [thread:$0]  (%p1153_p5), %s741_s12, 768, %s743_s13, %s713_s15, %s1078_s14, %s1078_s14, %s1079_s18  }
 0x24c   : > { %v678_v59 = vpop.f32.mrf.mxu3 }
 0x24d PF: > { %p926_p13 = scmp.ge.s32.totalorder %s1067_s24, 2  ;;  %s757_s17 = sand.u32 1, %s1055_s21  }
 0x24e   : > { %s758_s26 = scalar_lea.sflag [#allocation4], %s757_s17 }
 0x24f   : > { %p920_p0 = pnand %p926_p13, %p1157_p6 }
 0x251   : > { %p921_p1 = pneg %p920_p0 }
 0x253   : > { %1046 = dma.done.wait (%p921_p1), %s758_s26, 384  }
 0x254   : > { %1048 = vsyncadd (%p921_p1), %s758_s26, 4294966912  ;;  %s768_s28 = scalar_lea.sflag [#allocation6], %s757_s17 }
 0x255   : > { %1050 = dma.done.wait (%p921_p1), %s768_s28, 768  }
 0x256   : > { %1052 = vsyncadd (%p921_p1), %s768_s28, 4294966528  ;;  %p20_p5 = scmp.ge.s32.totalorder %s1140_s27, 4   ;;  %s1298_s21 = smov %s1059_s22 }
 0x257   : > { %s1299_s22 = smov %s1063_s23  ;;  %s1300_s23 = smov %s1151_s30 }
 0x258   : > { %s1301_s24 = smov %s1140_s27  ;;  %22 = sbr.rel (!%p20_p5) target bundleno = 5 (0x5), region = 96 }
 0x25d   :  { %774 = vsyncpa [#allocation4], 1 }
 0x25e   :  { %776 = vsyncpa [#allocation4 + $0x1], 1 }
 0x25f   :  { %777 = vsyncpa [#allocation6], 1 }
 0x260   :  { %779 = vsyncpa [#allocation6 + $0x1], 1 }

</bundles_post_ra>
